<compile_context>
chip_gen: v6e
topology: v6e:2x2x1
jax: 0.10.0
libtpu: 0.0.40
codegen_flags: <defaults>
</compile_context>

<pallas_src>
import numpy as np
import jax
import jax.numpy as jnp
from jax import lax
from jax.experimental import pallas as pl
from jax.experimental.pallas import tpu as pltpu

# Module hyper-parameters (small synthetic config, mirrors __C).
HIDDEN_SIZE = 32      # __C.HIDDEN_SIZE
FLAT_MLP_SIZE = 64    # __C.FLAT_MLP_SIZE
FLAT_GLIMPSES = 2     # __C.FLAT_GLIMPSES
FLAT_OUT_SIZE = 64    # __C.FLAT_OUT_SIZE
SEQ = 8
BATCH = 2

LANE = 128            # lane width; output is padded to a multiple of this
TARGET_ROWS = 256     # target MLP rows per grid step (v6e/v7x MXU-friendly; fine on v5e too)


def attflat_kernel(x_ref, mask_ref, w1_ref, b1_ref, w2_ref, b2_ref,
                   wm_ref, bm_ref, out_ref):
    bblk, s, h = x_ref.shape
    glimpses = w2_ref.shape[1]

    x3 = x_ref[...]                                   # (BBLK, S, H)
    x2 = x3.reshape(bblk * s, h)                      # fold batch into rows for the MLP

    # MLP: FC(H->M) -> ReLU -> FC(M->G), folded over the whole batch block.
    # TODO(synk): dropout inside the MLP is omitted (identity in eval mode).
    hid = jnp.dot(x2, w1_ref[...], preferred_element_type=jnp.float32) + b1_ref[...]
    hid = jnp.maximum(hid, 0.0)
    att = jnp.dot(hid, w2_ref[...], preferred_element_type=jnp.float32) + b2_ref[...]
    att = att.reshape(bblk, s, glimpses)              # (BBLK, S, G)

    # masked_fill(mask, -1e9) then softmax over the sequence axis (dim=1 in PyTorch).
    att = jnp.where(mask_ref[...] > 0.5, -1e9, att)   # mask is (BBLK, S, 1), VPU select
    att = att - jnp.max(att, axis=1, keepdims=True)
    e = jnp.exp(att)
    att = e / jnp.sum(e, axis=1, keepdims=True)       # (BBLK, S, G)

    # Glimpse-weighted sums as one batched MXU contraction over S: (BBLK, G, H).
    g = lax.dot_general(att, x3, (((1,), (1,)), ((0,), (0,))),
                        preferred_element_type=jnp.float32)

    # linear_merge: concat over glimpses @ Wm == sum_i g[:, i, :] @ Wm[i*H:(i+1)*H, :].
    acc = bm_ref[...]                                  # (1, OUT_PAD), broadcasts on add
    for i in range(glimpses):                          # static tiny loop (G == 2)
        acc = acc + jnp.dot(g[:, i, :], wm_ref[i * h:(i + 1) * h, :],
                            preferred_element_type=jnp.float32)
    out_ref[...] = acc.astype(out_ref.dtype)           # lane-dense (BBLK, OUT_PAD) store


def _pick_batch_block(bsz, seq, target_rows=TARGET_ROWS):
    """Largest batch block that divides B and keeps ~target_rows MLP rows per step."""
    bblk = max(1, min(bsz, max(1, target_rows // max(seq, 1))))
    while bsz % bblk:
        bblk -= 1
    return bblk


def attflat(x, x_mask, params):
    """x: (B, S, H) f32.  x_mask: (B, 1, 1, S) bool (True == masked), like PyTorch."""
    bsz, seq, hid = x.shape
    w1, b1, w2, b2, wm, bm = params
    mid = w1.shape[1]
    n_gl = w2.shape[1]
    out_size = wm.shape[1]
    out_pad = ((out_size + LANE - 1) // LANE) * LANE

    # Lane-dense output: zero-pad the merge weights / bias up to a full 128-lane slab.
    wm_p = jnp.pad(wm, ((0, 0), (0, out_pad - out_size)))
    bm_p = jnp.pad(bm, ((0, 0), (0, out_pad - out_size)))

    # Mask pre-laid-out as (B, S, 1) float (1.0 == masked): no in-kernel transpose.
    mask = jnp.reshape(x_mask, (bsz, seq, 1)).astype(jnp.float32)

    bblk = _pick_batch_block(bsz, seq)

    out = pl.pallas_call(
        attflat_kernel,
        out_shape=jax.ShapeDtypeStruct((bsz, out_pad), jnp.float32),
        grid_spec=pltpu.PrefetchScalarGridSpec(
            num_scalar_prefetch=0,
            grid=(bsz // bblk,),
            in_specs=[
                pl.BlockSpec((bblk, seq, hid), lambda i: (i, 0, 0)),       # x
                pl.BlockSpec((bblk, seq, 1), lambda i: (i, 0, 0)),         # mask
                pl.BlockSpec((hid, mid), lambda i: (0, 0)),                # w1
                pl.BlockSpec((1, mid), lambda i: (0, 0)),                  # b1
                pl.BlockSpec((mid, n_gl), lambda i: (0, 0)),               # w2
                pl.BlockSpec((1, n_gl), lambda i: (0, 0)),                 # b2
                pl.BlockSpec((hid * n_gl, out_pad), lambda i: (0, 0)),     # wm (padded)
                pl.BlockSpec((1, out_pad), lambda i: (0, 0)),              # bm (padded)
            ],
            out_specs=pl.BlockSpec((bblk, out_pad), lambda i: (i, 0)),
        ),
        compiler_params=pltpu.CompilerParams(
            dimension_semantics=("parallel",)),
    )(x, mask, w1, b1, w2, b2, wm_p, bm_p)

    return out[:, :out_size]


def reference_attflat(x, x_mask, params):
    """Pure-JAX reference mirroring the PyTorch forward."""
    w1, b1, w2, b2, wm, bm = params
    att = jnp.maximum(x @ w1 + b1, 0.0) @ w2 + b2                   # (B, S, G)
    m = jnp.reshape(x_mask, (x.shape[0], x.shape[1], 1))            # (B, S, 1) bool
    att = jnp.where(m, -1e9, att)
    att = jax.nn.softmax(att, axis=1)
    att_list = [jnp.sum(att[:, :, i:i + 1] * x, axis=1) for i in range(FLAT_GLIMPSES)]
    x_atted = jnp.concatenate(att_list, axis=1)                     # (B, H*G)
    return x_atted @ wm + bm


def make_params(key):
    ks = jax.random.split(key, 6)
    w1 = jax.random.normal(ks[0], (HIDDEN_SIZE, FLAT_MLP_SIZE), jnp.float32) * 0.1
    b1 = jax.random.normal(ks[1], (1, FLAT_MLP_SIZE), jnp.float32) * 0.01
    w2 = jax.random.normal(ks[2], (FLAT_MLP_SIZE, FLAT_GLIMPSES), jnp.float32) * 0.1
    b2 = jax.random.normal(ks[3], (1, FLAT_GLIMPSES), jnp.float32) * 0.01
    wm = jax.random.normal(ks[4], (HIDDEN_SIZE * FLAT_GLIMPSES, FLAT_OUT_SIZE), jnp.float32) * 0.1
    bm = jax.random.normal(ks[5], (1, FLAT_OUT_SIZE), jnp.float32) * 0.01
    return (w1, b1, w2, b2, wm, bm)


if __name__ == "__main__":
    key = jax.random.PRNGKey(0)
    kx, kp = jax.random.split(key)
    x = jax.random.normal(kx, (BATCH, SEQ, HIDDEN_SIZE), jnp.float32)

    # mask: batch 0 fully valid, batch 1 has last 3 positions masked (PyTorch-style
    # (B, 1, 1, S) bool, True == masked).
    lengths = jnp.array([SEQ, SEQ - 3])
    pos = jnp.arange(SEQ)[None, :]
    x_mask = (pos >= lengths[:, None]).reshape(BATCH, 1, 1, SEQ)

    params = make_params(kp)

    out = jax.block_until_ready(attflat(x, x_mask, params))
    ref = jax.block_until_ready(reference_attflat(x, x_mask, params))
    np.testing.assert_allclose(np.asarray(out), np.asarray(ref), rtol=1e-5, atol=1e-5)
    print("KERNEL_OK")
</pallas_src>

<mosaic_0001>
module attributes {stable_mosaic.version = 11 : i64} {
  func.func @attflat_kernel(%arg0: i32, %arg1: memref<2x8x32xf32, #tpu.memory_space<vmem>>, %arg2: memref<2x8x1xf32, #tpu.memory_space<vmem>>, %arg3: memref<32x64xf32, #tpu.memory_space<vmem>>, %arg4: memref<1x64xf32, #tpu.memory_space<vmem>>, %arg5: memref<64x2xf32, #tpu.memory_space<vmem>>, %arg6: memref<1x2xf32, #tpu.memory_space<vmem>>, %arg7: memref<64x128xf32, #tpu.memory_space<vmem>>, %arg8: memref<1x128xf32, #tpu.memory_space<vmem>>, %arg9: memref<2x128xf32, #tpu.memory_space<vmem>>) attributes {dimension_semantics = [#tpu.dimension_semantics<parallel>], iteration_bounds = array<i64: 1>, scalar_prefetch = 0 : i64, scratch_operands = 0 : i64, tpu.core_type = #tpu.core_type<tc>, window_params = [{transform_indices = @transform_0, window_bounds = array<i64: 2, 8, 32>}, {transform_indices = @transform_1, window_bounds = array<i64: 2, 8, 1>}, {pipeline_mode = #tpu.pipeline_mode<synchronous>, transform_indices = @transform_2, window_bounds = array<i64: 32, 64>}, {pipeline_mode = #tpu.pipeline_mode<synchronous>, transform_indices = @transform_3, window_bounds = array<i64: 1, 64>}, {pipeline_mode = #tpu.pipeline_mode<synchronous>, transform_indices = @transform_4, window_bounds = array<i64: 64, 2>}, {pipeline_mode = #tpu.pipeline_mode<synchronous>, transform_indices = @transform_5, window_bounds = array<i64: 1, 2>}, {pipeline_mode = #tpu.pipeline_mode<synchronous>, transform_indices = @transform_6, window_bounds = array<i64: 64, 128>}, {pipeline_mode = #tpu.pipeline_mode<synchronous>, transform_indices = @transform_7, window_bounds = array<i64: 1, 128>}, {transform_indices = @transform_8, window_bounds = array<i64: 2, 128>}]} {
    %c0 = arith.constant 0 : index
    %c0_0 = arith.constant 0 : index
    %c0_1 = arith.constant 0 : index
    %0 = vector.load %arg1[%c0, %c0_0, %c0_1] : memref<2x8x32xf32, #tpu.memory_space<vmem>>, vector<2x8x32xf32>
    %1 = vector.shape_cast %0 : vector<2x8x32xf32> to vector<16x32xf32>
    %c0_2 = arith.constant 0 : index
    %c0_3 = arith.constant 0 : index
    %2 = vector.load %arg3[%c0_2, %c0_3] : memref<32x64xf32, #tpu.memory_space<vmem>>, vector<32x64xf32>
    %cst = arith.constant dense<0.000000e+00> : vector<16x64xf32>
    %3 = tpu.matmul %1, %2, %cst {dimension_numbers = #tpu.dot_dimension_numbers<[1], [0], [0], [1], [0, 0, 1, 1], [], []>} : vector<16x32xf32>, vector<32x64xf32>, vector<16x64xf32> -> vector<16x64xf32>
    %c0_4 = arith.constant 0 : index
    %c0_5 = arith.constant 0 : index
    %4 = vector.load %arg4[%c0_4, %c0_5] : memref<1x64xf32, #tpu.memory_space<vmem>>, vector<1x64xf32>
    %5 = vector.broadcast %4 : vector<1x64xf32> to vector<16x64xf32>
    %6 = arith.addf %3, %5 : vector<16x64xf32>
    %cst_6 = arith.constant 0.000000e+00 : f32
    %7 = vector.broadcast %cst_6 : f32 to vector<16x64xf32>
    %8 = arith.maximumf %6, %7 : vector<16x64xf32>
    %c0_7 = arith.constant 0 : index
    %c0_8 = arith.constant 0 : index
    %9 = vector.load %arg5[%c0_7, %c0_8] : memref<64x2xf32, #tpu.memory_space<vmem>>, vector<64x2xf32>
    %cst_9 = arith.constant dense<0.000000e+00> : vector<16x2xf32>
    %10 = tpu.matmul %8, %9, %cst_9 {dimension_numbers = #tpu.dot_dimension_numbers<[1], [0], [0], [1], [0, 0, 1, 1], [], []>} : vector<16x64xf32>, vector<64x2xf32>, vector<16x2xf32> -> vector<16x2xf32>
    %c0_10 = arith.constant 0 : index
    %c0_11 = arith.constant 0 : index
    %11 = vector.load %arg6[%c0_10, %c0_11] : memref<1x2xf32, #tpu.memory_space<vmem>>, vector<1x2xf32>
    %12 = vector.broadcast %11 : vector<1x2xf32> to vector<16x2xf32>
    %13 = arith.addf %10, %12 : vector<16x2xf32>
    %14 = vector.shape_cast %13 : vector<16x2xf32> to vector<2x8x2xf32>
    %c0_12 = arith.constant 0 : index
    %c0_13 = arith.constant 0 : index
    %c0_14 = arith.constant 0 : index
    %15 = vector.load %arg2[%c0_12, %c0_13, %c0_14] : memref<2x8x1xf32, #tpu.memory_space<vmem>>, vector<2x8x1xf32>
    %cst_15 = arith.constant 5.000000e-01 : f32
    %16 = vector.broadcast %cst_15 : f32 to vector<2x8x1xf32>
    %17 = arith.cmpf ogt, %15, %16 : vector<2x8x1xf32>
    %cst_16 = arith.constant -1.000000e+09 : f32
    %18 = vector.shape_cast %17 : vector<2x8x1xi1> to vector<2x8x1xi1>
    %19 = vector.broadcast %18 : vector<2x8x1xi1> to vector<2x8x2xi1>
    %20 = vector.broadcast %cst_16 : f32 to vector<2x8x2xf32>
    %21 = arith.select %19, %20, %14 : vector<2x8x2xi1>, vector<2x8x2xf32>
    %cst_17 = arith.constant dense<0xFF800000> : vector<2x2xf32>
    %22 = vector.multi_reduction <maximumf>, %21, %cst_17 [1] : vector<2x8x2xf32> to vector<2x2xf32>
    %23 = vector.shape_cast %22 : vector<2x2xf32> to vector<2x1x2xf32>
    %24 = vector.broadcast %23 : vector<2x1x2xf32> to vector<2x8x2xf32>
    %25 = arith.subf %21, %24 : vector<2x8x2xf32>
    %26 = math.exp %25 : vector<2x8x2xf32>
    %cst_18 = arith.constant dense<0.000000e+00> : vector<2x2xf32>
    %27 = vector.multi_reduction <add>, %26, %cst_18 [1] : vector<2x8x2xf32> to vector<2x2xf32>
    %28 = vector.shape_cast %27 : vector<2x2xf32> to vector<2x1x2xf32>
    %29 = vector.broadcast %28 : vector<2x1x2xf32> to vector<2x8x2xf32>
    %30 = arith.divf %26, %29 : vector<2x8x2xf32>
    %cst_19 = arith.constant dense<0.000000e+00> : vector<2x2x32xf32>
    %31 = tpu.matmul %30, %0, %cst_19 {dimension_numbers = #tpu.dot_dimension_numbers<[1], [1], [2], [2], [0, 0, 0, 2, 1, 2], [0], [0]>} : vector<2x8x2xf32>, vector<2x8x32xf32>, vector<2x2x32xf32> -> vector<2x2x32xf32>
    %c0_20 = arith.constant 0 : index
    %c0_21 = arith.constant 0 : index
    %32 = vector.load %arg8[%c0_20, %c0_21] : memref<1x128xf32, #tpu.memory_space<vmem>>, vector<1x128xf32>
    %33 = vector.extract_strided_slice %31 {offsets = [0, 0, 0], sizes = [2, 1, 32], strides = [1, 1, 1]} : vector<2x2x32xf32> to vector<2x1x32xf32>
    %34 = vector.shape_cast %33 : vector<2x1x32xf32> to vector<2x32xf32>
    %c0_22 = arith.constant 0 : index
    %c0_23 = arith.constant 0 : index
    %35 = vector.load %arg7[%c0_22, %c0_23] : memref<64x128xf32, #tpu.memory_space<vmem>>, vector<32x128xf32>
    %cst_24 = arith.constant dense<0.000000e+00> : vector<2x128xf32>
    %36 = tpu.matmul %34, %35, %cst_24 {dimension_numbers = #tpu.dot_dimension_numbers<[1], [0], [0], [1], [0, 0, 1, 1], [], []>} : vector<2x32xf32>, vector<32x128xf32>, vector<2x128xf32> -> vector<2x128xf32>
    %37 = vector.broadcast %32 : vector<1x128xf32> to vector<2x128xf32>
    %38 = arith.addf %37, %36 : vector<2x128xf32>
    %39 = vector.extract_strided_slice %31 {offsets = [0, 1, 0], sizes = [2, 1, 32], strides = [1, 1, 1]} : vector<2x2x32xf32> to vector<2x1x32xf32>
    %40 = vector.shape_cast %39 : vector<2x1x32xf32> to vector<2x32xf32>
    %c32 = arith.constant 32 : index
    %c0_25 = arith.constant 0 : index
    %41 = vector.load %arg7[%c32, %c0_25] : memref<64x128xf32, #tpu.memory_space<vmem>>, vector<32x128xf32>
    %cst_26 = arith.constant dense<0.000000e+00> : vector<2x128xf32>
    %42 = tpu.matmul %40, %41, %cst_26 {dimension_numbers = #tpu.dot_dimension_numbers<[1], [0], [0], [1], [0, 0, 1, 1], [], []>} : vector<2x32xf32>, vector<32x128xf32>, vector<2x128xf32> -> vector<2x128xf32>
    %43 = arith.addf %38, %42 : vector<2x128xf32>
    %c0_27 = arith.constant 0 : index
    %c0_28 = arith.constant 0 : index
    %44 = vector.load %arg9[%c0_27, %c0_28] : memref<2x128xf32, #tpu.memory_space<vmem>>, vector<2x128xf32>
    tpu.vector_store %arg9[%c0_27, %c0_28], %43 {strides = array<i32>} : memref<2x128xf32, #tpu.memory_space<vmem>>, vector<2x128xf32>,
    return
  }
  func.func @transform_0(%arg0: i32) -> (i32, i32, i32) {
    %c0_i32 = arith.constant 0 : i32
    %c0_i32_0 = arith.constant 0 : i32
    %c0_i32_1 = arith.constant 0 : i32
    return %arg0, %c0_i32, %c0_i32_0 : i32, i32, i32
  }
  func.func @transform_1(%arg0: i32) -> (i32, i32, i32) {
    %c0_i32 = arith.constant 0 : i32
    %c0_i32_0 = arith.constant 0 : i32
    %c0_i32_1 = arith.constant 0 : i32
    return %arg0, %c0_i32, %c0_i32_0 : i32, i32, i32
  }
  func.func @transform_2(%arg0: i32) -> (i32, i32) {
    %c0_i32 = arith.constant 0 : i32
    %c0_i32_0 = arith.constant 0 : i32
    %c0_i32_1 = arith.constant 0 : i32
    return %c0_i32, %c0_i32_0 : i32, i32
  }
  func.func @transform_3(%arg0: i32) -> (i32, i32) {
    %c0_i32 = arith.constant 0 : i32
    %c0_i32_0 = arith.constant 0 : i32
    %c0_i32_1 = arith.constant 0 : i32
    return %c0_i32, %c0_i32_0 : i32, i32
  }
  func.func @transform_4(%arg0: i32) -> (i32, i32) {
    %c0_i32 = arith.constant 0 : i32
    %c0_i32_0 = arith.constant 0 : i32
    %c0_i32_1 = arith.constant 0 : i32
    return %c0_i32, %c0_i32_0 : i32, i32
  }
  func.func @transform_5(%arg0: i32) -> (i32, i32) {
    %c0_i32 = arith.constant 0 : i32
    %c0_i32_0 = arith.constant 0 : i32
    %c0_i32_1 = arith.constant 0 : i32
    return %c0_i32, %c0_i32_0 : i32, i32
  }
  func.func @transform_6(%arg0: i32) -> (i32, i32) {
    %c0_i32 = arith.constant 0 : i32
    %c0_i32_0 = arith.constant 0 : i32
    %c0_i32_1 = arith.constant 0 : i32
    return %c0_i32, %c0_i32_0 : i32, i32
  }
  func.func @transform_7(%arg0: i32) -> (i32, i32) {
    %c0_i32 = arith.constant 0 : i32
    %c0_i32_0 = arith.constant 0 : i32
    %c0_i32_1 = arith.constant 0 : i32
    return %c0_i32, %c0_i32_0 : i32, i32
  }
  func.func @transform_8(%arg0: i32) -> (i32, i32) {
    %c0_i32 = arith.constant 0 : i32
    %c0_i32_0 = arith.constant 0 : i32
    return %arg0, %c0_i32 : i32, i32
  }
}

</mosaic_0001>

<bundles_post_ra>
// kernel: tpu_custom_call.1
= control target key start
LH: loop header
LB: loop body
LE: loop exit
PB: predicated region body
PF: predicated region fallthrough
CT: control target
= control target key end

     0   :  { %13 = vsyncpa [#allocation3], 0  ;;  %s1008_s0 = inlined_call_operand.vmem [shape: f32[2,8,32], index: 0, kind: input, shape index: {}]   ;;  %s1009_s1 = inlined_call_operand.vmem [shape: f32[2,8,1], index: 1, kind: input, shape index: {}]   ;;  %s1010_s2 = inlined_call_operand.hbm [shape: f32[32,64], index: 2, kind: input, shape index: {}]   ;;  %s1011_s3 = inlined_call_operand.vmem [shape: f32[1,64], index: 3, kind: input, shape index: {}]   ;;  %s1012_s4 = inlined_call_operand.vmem [shape: f32[64,2], index: 4, kind: input, shape index: {}]   ;;  %s1013_s5 = inlined_call_operand.vmem [shape: f32[1,2], index: 5, kind: input, shape index: {}]   ;;  %s1014_s6 = inlined_call_operand.vmem [shape: f32[64,128], index: 6, kind: input, shape index: {}]   ;;  %s1015_s7 = inlined_call_operand.vmem [shape: f32[1,128], index: 7, kind: input, shape index: {}]   ;;  %s1016_s8 = inlined_call_operand.hbm [shape: f32[2,128], index: 8, kind: output, shape index: {}]  }
   0x1   :  { %14 = vsyncpa [#allocation4], 0  ;;  %s851_s27 = smov [#allocation2]  }
   0x2   :  { %s24_s28 = sshll.u32 %s851_s27, 4  ;;  %s25_s28 = int_to_ptr.vmem [resolvable:$true] %s24_s28 }
   0x3   :  { %s815_s29 = scalar_lea.vmem %s25_s28, 512  ;;  %p820_p1 = scmp.lt.s32.totalorder %s25_s28, %s25_s28 }
   0x4   :  { %p816_p0 = scmp.ne.s32.totalorder %s25_s28, %s815_s29  ;;  %p821_p2 = scmp.lt.s32.totalorder %s815_s29, %s815_s29 }
   0x6   :  { %p822_p3 = por %p821_p2, %p820_p1 }
   0x8   :  { %p823_p4 = pnand %p822_p3, %p816_p0 }
   0xa   :  { %826 = shalt.err (!%p823_p4)
}
   0xb   :  { %s852_s30 = smov 128   ;;  %s853_s9 = smov 8  }
   0xc   :  { %30 = dma.hbm_to_vmem [thread:$0]  %s1010_s2, 512, %s25_s28, [#allocation3], %s852_s30, %s852_s30, %s853_s9  }
   0xd   :  { %847 = dma.done.wait [#allocation3], 512  }
   0xe   :  { %848 = vsyncadd [#allocation3], 4294966784  ;;  %vm57_vm0 = vcmask 261120   ;;  %v49_v0 = vld [vmem:[#allocation2 + $0x18] sm:$0xff]  ;;  %v48_v1 = vld [vmem:[#allocation2 + $0x10] sm:$0xff]  ;;  %v854_v16 = vmov 0  }
   0xf   :  { %729 = vmatprep.subr.mxu0 %v49_v0  ;;  %v44_v2 = vld [vmem:[%s1008_s0] sm:$0xff]  ;;  %v47_v3 = vld [vmem:[#allocation2 + $0x8] sm:$0xff]  ;;  %v148_v4 = vld [vmem:[%s1012_s4 + $0x38] sm:$0xff]  ;;  %798 = vset.pattern.permute.xlu0 %v854_v16  ;;  %vm156_vm3 = vcmask 523264   ;;  %v855_v26 = vmov 0.0   ;;  %vm856_vm4 = vmmov 0  }
  0x10   :  { %730 = vmatpush3.msra.mxu0 %v49_v0  ;;  %737 = vmatprep.mubr.msk.f32.mxu0 %vm57_vm0, %v44_v2  ;;  %v147_v5 = vld [vmem:[%s1012_s4 + $0x30] sm:$0xff]  ;;  %v46_v6 = vld [vmem:[#allocation2] sm:$0xff]  ;;  %v146_v7 = vld [vmem:[%s1012_s4 + $0x28] sm:$0xff]  ;;  %vm254_vm6 = vcmask 15360   ;;  %vm325_vm8 = vcmask 64512   ;;  %vm512_vm9 = vcmask 1041409  }
  0x11   :  { %731 = vmatprep.subr.mxu0 %v48_v1  ;;  %740 = vmatprep.subr.mxu1 %v148_v4  ;;  %v922_v8 = vld [vmem:[%s1008_s0 + $0x8] sm:$0xff]  ;;  %v145_v9 = vld [vmem:[%s1012_s4 + $0x20] sm:$0xff]  ;;  %v144_v10 = vld [vmem:[%s1012_s4 + $0x18] sm:$0xff] }
  0x12   :  { %732 = vmatpush3.msra.mxu0 %v48_v1  ;;  %741 = vmatpush3.msra.mxu1 %v148_v4  ;;  %v143_v11 = vld [vmem:[%s1012_s4 + $0x10] sm:$0xff]  ;;  %v142_v12 = vld [vmem:[%s1012_s4 + $0x8] sm:$0xff]  ;;  %v141_v13 = vld [vmem:[%s1012_s4] sm:$0xff] }
  0x13   :  { %733 = vmatprep.subr.mxu0 %v47_v3  ;;  %742 = vmatprep.subr.mxu1 %v147_v5  ;;  %v238_v14 = vld [vmem:[%s1009_s1] sm:$0xff]  ;;  %v239_v15 = vld [vmem:[%s1009_s1 + $0x8] sm:$0xff] }
  0x14   :  { %734 = vmatpush3.msra.mxu0 %v47_v3  ;;  %743 = vmatpush3.msra.mxu1 %v147_v5  ;;  %vm240_vm1 = vcmp.gt.f32.partialorder %v238_v14, 0.5  ;;  %vm241_vm2 = vcmp.gt.f32.partialorder %v239_v15, 0.5  ;;  %v688_v19 = vld [vmem:[%s1011_s3] ss:$0 sm:$0xff]  ;;  %v508_v14 = vld [vmem:[%s1014_s6 + $0x18] sm:$0xff]  ;;  %v595_v15 = vld [vmem:[%s1014_s6 + $0x30] sm:$0xff] }
  0x15   :  { %735 = vmatprep.subr.mxu0 %v46_v6  ;;  %744 = vmatprep.subr.mxu1 %v146_v7  ;;  %v242_v17 = vsel %vm240_vm1, 1, %v854_v16  ;;  %v243_v18 = vsel %vm241_vm2, 1, %v854_v16  ;;  %v691_v29 = vld [vmem:[%s1013_s5] ss:$0 sm:$0xff]  ;;  %v594_v16 = vld [vmem:[%s1014_s6 + $0x28] sm:$0xff] }
  0x16   :  { %736 = vmatpush3.msra.mxu0 %v46_v6  ;;  %745 = vmatpush3.msra.mxu1 %v146_v7 }
  0x17   :  { %738 = vmatmul.mubr.msk.f32.vlgmr.msra.gmra.mxu0 %vm57_vm0, %v922_v8  ;;  %746 = vmatprep.subr.mxu1 %v145_v9 }
  0x18   :  { %747 = vmatpush3.msra.mxu1 %v145_v9  ;;  %245 = vperm.xlu0 %798, %v242_v17   ;;  %v506_v17 = vld [vmem:[%s1014_s6 + $0x8] sm:$0xff] }
  0x19   :  { %748 = vmatprep.subr.mxu1 %v144_v10  ;;  %759 = vmatprep.subr.mxu0 %v855_v26 }
  0x1a   :  { %749 = vmatpush3.msra.mxu1 %v144_v10  ;;  %761 = vmatprep.mubr.msk.f32.mxu0 %vm856_vm4, %v855_v26  ;;  %v596_v10 = vld [vmem:[%s1014_s6 + $0x38] sm:$0xff] }
  0x1b   :  { %750 = vmatprep.subr.mxu1 %v143_v11  ;;  %760 = vmatpush3.msra.mxu0 %v44_v2 }
  0x1c   :  { %751 = vmatpush3.msra.mxu1 %v143_v11  ;;  %248 = vperm.xlu0 %798, %v243_v18   ;;  %v593_v18 = vld [vmem:[%s1014_s6 + $0x20] sm:$0xff] }
  0x1d   :  { %752 = vmatprep.subr.mxu1 %v142_v12  ;;  %764 = vmatprep.subr.mxu0 %v855_v26 }
  0x1e   :  { %753 = vmatpush3.msra.mxu1 %v142_v12 }
  0x1f   :  { %754 = vmatprep.subr.mxu1 %v141_v13 }
  0x20   :  { %755 = vmatpush3.msra.mxu1 %v141_v13 }
  0x21   :  { %780 = vmatprep.subr.mxu1 %v855_v26 }
  0x93   :  { %v246_v27 = vpop.permute.xlu0 %245 }
  0x94   :  { %vm250_vm7 = vcmp.eq.s32.totalorder %v246_v27, 1 }
  0x97   :  { %v249_v28 = vpop.permute.xlu0 %248 }
  0x98   :  { %vm251_vm5 = vcmp.eq.s32.totalorder %v249_v28, 1 }
  0xd7   :  { %v739_v20 = vpop.f32.mrf.mxu0 }
  0xd8   :  { %v136_v21 = vadd.f32 %v739_v20, %v688_v19 }
  0xd9   :  { %v130_v22 = vpop.f32.mrf.mxu0 }
  0xda   :  { %v131_v23 = vadd.f32 %v688_v19, %v130_v22  ;;  %v140_v25 = vmax.f32 %v136_v21, 0.0  ;;  %v505_v19 = vld [vmem:[%s1014_s6] sm:$0xff] }
  0xdc   :  { %v139_v24 = vmax.f32 %v131_v23, 0.0 }
  0xde   :  { %756 = vmatprep.mubr.msk.f32.mxu1 %vm156_vm3, %v139_v24 }
  0xdf   :  { %757 = vmatmul.mubr.msk.f32.vlgmr.msra.gmra.mxu1 %vm156_vm3, %v140_v25 }
  0xe0   :  { %788 = vmatprep.mubr.msk.f32.mxu1 %vm856_vm4, %v855_v26  ;;  %781 = vmatpush3.msra.mxu1 %v596_v10 }
  0xe1   :  { %782 = vmatprep.subr.mxu1 %v855_v26 }
  0xe2   :  { %783 = vmatpush3.msra.mxu1 %v595_v15 }
  0xe3   :  { %784 = vmatprep.subr.mxu1 %v855_v26 }
  0xe4   :  { %785 = vmatpush3.msra.mxu1 %v594_v16 }
  0xe5   :  { %786 = vmatprep.subr.mxu1 %v855_v26 }
  0xe6   :  { %787 = vmatpush3.msra.mxu1 %v593_v18 }
 0x19f   :  { %v758_v30 = vpop.f32.mrf.mxu1 }
 0x1a0   :  { %v235_v31 = vadd.f32 %v758_v30, %v691_v29 }
 0x1a1   :  { %v229_v32 = vpop.f32.mrf.mxu1 }
 0x1a2   :  { %v253_v33 = vsel %vm251_vm5, -1e+09, %v235_v31  ;;  %v230_v34 = vadd.f32 %v691_v29, %v229_v32 }
 0x1a3   :  { %v262_v35 = vsel %vm254_vm6, %v253_v33, -inf }
 0x1a4   :  { %v263_v36 = vrot.slane %v262_v35, 4  ;;  %v252_v37 = vsel %vm250_vm7, -1e+09, %v230_v34 }
 0x1a5   :  { %v255_v38 = vsel %vm254_vm6, %v252_v37, -inf }
 0x1a6   :  { %v264_v39 = vmax.f32 %v262_v35, %v263_v36  ;;  %v256_v40 = vrot.slane %v255_v38, 4 }
 0x1a8   :  { %v265_v41 = vrot.slane %v264_v39, 2  ;;  %v257_v42 = vmax.f32 %v255_v38, %v256_v40 }
 0x1aa   :  { %v266_v43 = vmax.f32 %v264_v39, %v265_v41  ;;  %v258_v44 = vrot.slane %v257_v42, 2 }
 0x1ac   :  { %v267_v45 = vrot.slane %v266_v43, 1  ;;  %v259_v46 = vmax.f32 %v257_v42, %v258_v44 }
 0x1ae   :  { %v268_v47 = vmax.f32 %v266_v43, %v267_v45  ;;  %v260_v48 = vrot.slane %v259_v46, 1 }
 0x1b0   :  { %v270_v49 = vsub.f32 %v253_v33, %v268_v47  ;;  %v261_v50 = vmax.f32 %v259_v46, %v260_v48 }
 0x1b2   :  { %v273_v51 = vmul.f32 1.442695, %v270_v49  ;;  %v269_v52 = vsub.f32 %v252_v37, %v261_v50 }
 0x1b4   :  { %799 = vpow2.f32 %v273_v51  ;;  %v271_v53 = vmul.f32 1.442695, %v269_v52 }
 0x1b6   :  { %801 = vpow2.f32 %v271_v53 }
 0x1c1   :  { %v800_v54 = vpop.eup %799 }
 0x1c2   :  { %v282_v55 = vsel %vm254_vm6, %v800_v54, 0.0 }
 0x1c3   :  { %v802_v56 = vpop.eup %801  ;;  %v283_v57 = vrot.slane %v282_v55, 4 }
 0x1c4   :  { %v275_v58 = vsel %vm254_vm6, %v802_v56, 0.0 }
 0x1c5   :  { %v284_v59 = vadd.f32 %v283_v57, %v282_v55  ;;  %v276_v60 = vrot.slane %v275_v58, 4 }
 0x1c7   :  { %v285_v61 = vrot.slane %v284_v59, 2  ;;  %v277_v62 = vadd.f32 %v276_v60, %v275_v58 }
 0x1c9   :  { %v286_v63 = vadd.f32 %v285_v61, %v284_v59  ;;  %v278_v0 = vrot.slane %v277_v62, 2 }
 0x1cb   :  { %v287_v1 = vrot.slane %v286_v63, 1  ;;  %v279_v2 = vadd.f32 %v278_v0, %v277_v62 }
 0x1cd   :  { %v280_v3 = vrot.slane %v279_v2, 1  ;;  %v288_v4 = vadd.f32 %v287_v1, %v286_v63 }
 0x1cf   :  { %v281_v5 = vadd.f32 %v280_v3, %v279_v2 }
 0x1d1   :  { %803 = vrcp.f32 %v281_v5 }
 0x1d2   :  { %805 = vrcp.f32 %v288_v4 }
 0x1de   :  { %v804_v6 = vpop.eup %803 }
 0x1df   :  { %v290_v7 = vmul.f32 %v804_v6, %v802_v56  ;;  %v806_v9 = vpop.eup %805 }
 0x1e0   :  { %v292_v11 = vmul.f32 %v806_v9, %v800_v54 }
 0x1e1   :  { %293 = vxpose.xlu1.b32.start.end [1/1] (short) (narrow) %v290_v7, 8 }
 0x1e5   :  { %399 = vxpose.xlu1.b32.start.end [1/1] (short) (narrow) %v292_v11, 8 }
 0x25d   :  { %v309_v12 = vpop.trf.xlu1 }
 0x25e   :  { %762 = vmatmul.mubr.msk.f32.vlgmr.msra.gmra.mxu0 %vm325_vm8, %v309_v12 }
 0x25f   :  { %765 = vmatpush3.msra.mxu0 %v922_v8  ;;  %766 = vmatprep.mubr.msk.f32.mxu0 %vm856_vm4, %v855_v26  ;;  %v507_v8 = vld [vmem:[%s1014_s6 + $0x10] sm:$0xff]  ;;  %s857_s6 = smov [#allocation5]  }
 0x260   :  { %769 = vmatprep.subr.mxu0 %v855_v26  ;;  %s679_s28 = sshll.u32 %s857_s6, 4  ;;  %s680_s28 = int_to_ptr.vmem [resolvable:$true] %s679_s28 }
 0x261   :  { %v415_v13 = vpop.trf.xlu1  ;;  %s827_s29 = scalar_lea.vmem %s680_s28, 32  ;;  %p832_p6 = scmp.lt.s32.totalorder %s680_s28, %s680_s28 }
 0x262   :  { %767 = vmatmul.mubr.msk.f32.vlgmr.msra.gmra.mxu0 %vm325_vm8, %v415_v13  ;;  %p828_p5 = scmp.ne.s32.totalorder %s680_s28, %s827_s29  ;;  %p833_p7 = scmp.lt.s32.totalorder %s827_s29, %s827_s29 }
 0x263   :  { %777 = vmatprep.mubr.msk.f32.mxu0 %vm856_vm4, %v855_v26  ;;  %770 = vmatpush3.msra.mxu0 %v508_v14 }
 0x264   :  { %771 = vmatprep.subr.mxu0 %v855_v26  ;;  %p834_p8 = por %p833_p7, %p832_p6 }
 0x265   :  { %772 = vmatpush3.msra.mxu0 %v507_v8 }
 0x266   :  { %773 = vmatprep.subr.mxu0 %v855_v26  ;;  %p835_p9 = pnand %p834_p8, %p828_p5 }
 0x267   :  { %774 = vmatpush3.msra.mxu0 %v506_v17 }
 0x268   :  { %775 = vmatprep.subr.mxu0 %v855_v26  ;;  %v697_v26 = vld [vmem:[%s1015_s7] ss:$0 sm:$0xff] }
 0x269   :  { %776 = vmatpush3.msra.mxu0 %v505_v19 }
 0x31e   :  { %v395_v20 = vpop.f32.mrf.mxu0 }
 0x31f   :  { %v597_v22 = vrot.slane %v395_v20, 1 }
 0x320   :  { %v763_v21 = vpop.f32.mrf.mxu0 }
 0x322   :  { %v500_v23 = vpop.f32.mrf.mxu0 }
 0x323   :  { %v511_v24 = vrot.slane %v500_v23, 7  ;;  %v598_v25 = vsel %vm512_vm9, %v500_v23, %v597_v22 }
 0x324   :  { %v768_v27 = vpop.f32.mrf.mxu0  ;;  %789 = vmatmul.mubr.msk.f32.vlgmr.msra.gmra.mxu1 %vm57_vm0, %v598_v25 }
 0x325   :  { %v513_v28 = vsel %vm512_vm9, %v511_v24, %v395_v20 }
 0x326   :  { %778 = vmatmul.mubr.msk.f32.vlgmr.msra.gmra.mxu0 %vm57_vm0, %v513_v28 }
 0x3e4   :  { %v667_v29 = vpop.f32.mrf.mxu1 }
 0x3e6   :  { %v582_v30 = vpop.f32.mrf.mxu0  ;;  %v790_v31 = vpop.f32.mrf.mxu1 }
 0x3e7   :  { %v592_v32 = vadd.f32 %v697_v26, %v582_v30 }
 0x3e8   :  { %v779_v33 = vpop.f32.mrf.mxu0 }
 0x3e9   :  { %v671_v34 = vadd.f32 %v667_v29, %v592_v32 }
 0x3eb   :  { %672 = vst [vmem:[#allocation5] sm:$0x3] %v671_v34 }
 0x3ec   :  { %838 = shalt.err (!%p835_p9)
}
 0x3ed   :  { %682 = dma.vmem_to_hbm [thread:$0]  %s680_s28, 32, %s1016_s8, [#allocation4]  }
 0x3ee   :  { %849 = dma.done.wait [#allocation4], 32  }
 0x3ef   :  { %850 = vsyncadd [#allocation4], 4294967264 }
 0x3f0   :  { %686 = vsyncpa [#allocation3], 1 }
 0x3f1   :  { %687 = vsyncpa [#allocation4], 1 }

</bundles_post_ra>
